<compile_context>
chip_gen: v7x
topology: tpu7x:2x2x1
jax: 0.10.0
libtpu: 0.0.40
codegen_flags: <defaults>
</compile_context>

<pallas_src>
import math

import jax
import jax.numpy as jnp
import numpy as np
from jax.experimental import pallas as pl
from jax.experimental.pallas import tpu as pltpu

# ---- model hyper-parameters (small, consistent with the module __init__) ----
VOCAB = 100
HIDDEN = 32            # transformer hidden_size
FFN = 64               # feed-forward width of the synthetic encoder layer
N_FILTERS = 4
FILTER_SIZES = (2, 3, 4)
K_MAX = max(FILTER_SIZES)
F_TOT = N_FILTERS * len(FILTER_SIZES)       # 12 pooled features
CLASS_NUM = 5
BATCH = 2
SEQ = 8

OUT_LANES = 128        # lane-dense combined output slab width

# ---- packed small-parameter blob row layout ([VEC_ROWS_PAD, 128] f32) -------
R_BQKV = 0             # [:3H]      packed q/k/v bias
R_BO = 1               # [:H]       attn output bias
R_LN1G = 2             # [:H]
R_LN1B = 3             # [:H]
R_B1 = 4               # [:FFN]
R_B2 = 5               # [:H]
R_LN2G = 6             # [:H]
R_LN2B = 7             # [:H]
R_CONVB = 8            # [:F_TOT]   packed conv biases
R_FCB = 9              # [:CLASS]   fc bias
R_PMASK = 10           # rows [R_PMASK, R_PMASK+SEQ), [:F_TOT]  pool mask (0 / -1e30)
R_FCW = R_PMASK + SEQ  # rows [R_FCW, R_FCW+F_TOT),   [:CLASS]  fc weight
VEC_ROWS = R_FCW + F_TOT
VEC_ROWS_PAD = 32

assert VEC_ROWS <= VEC_ROWS_PAD
assert F_TOT + CLASS_NUM <= OUT_LANES


# -----------------------------------------------------------------------------
# Fused kernel: embedding -> encoder -> 3x conv+relu+maxpool -> fc
# -----------------------------------------------------------------------------
def _fused_kernel(ids_ref, mask_ref, emb_ref, wqkv_ref, wo_ref,
                  w1_ref, w2_ref, wconv_ref, vec_ref, out_ref):
    B, S = mask_ref.shape
    H = HIDDEN
    G = B * S

    v = vec_ref[...]                                    # [32, 128] packed small params

    # -- embedding lookup: one-hot matmul gather against the VMEM-resident table
    ids = ids_ref[...]                                  # [G, 1] int32
    vocab_iota = jax.lax.broadcasted_iota(jnp.int32, (G, VOCAB), 1)
    onehot = (ids == vocab_iota).astype(jnp.float32)    # [G, VOCAB]
    x2 = jnp.dot(onehot, emb_ref[...],
                 preferred_element_type=jnp.float32)    # [G, H]

    # -- synthetic single-layer transformer encoder --------------------------
    qkv = jnp.dot(x2, wqkv_ref[...], preferred_element_type=jnp.float32)
    qkv = qkv + v[R_BQKV:R_BQKV + 1, :3 * H]            # fused QKV projection
    q = qkv[:, 0 * H:1 * H].reshape(B, S, H)
    k = qkv[:, 1 * H:2 * H].reshape(B, S, H)
    val = qkv[:, 2 * H:3 * H].reshape(B, S, H)

    mask = mask_ref[...]                                # [B, S] (1 keep / 0 pad)
    scores = jnp.einsum('bqd,bkd->bqk', q, k,
                        preferred_element_type=jnp.float32) * (1.0 / math.sqrt(H))
    scores = scores + (mask[:, None, :] - 1.0) * 1e9    # masked keys -> -1e9

    m = jnp.max(scores, axis=-1, keepdims=True)
    e = jnp.exp(scores - m)
    p = e * pl.reciprocal(jnp.sum(e, axis=-1, keepdims=True), approx=True)

    ctx = jnp.einsum('bqk,bkd->bqd', p, val,
                     preferred_element_type=jnp.float32).reshape(G, H)
    attn = (jnp.dot(ctx, wo_ref[...], preferred_element_type=jnp.float32)
            + v[R_BO:R_BO + 1, :H])

    def layer_norm(y, g, b):
        mu = jnp.mean(y, axis=-1, keepdims=True)
        var = jnp.mean((y - mu) ** 2, axis=-1, keepdims=True)
        return (y - mu) * jax.lax.rsqrt(var + 1e-5) * g + b

    h1 = layer_norm(x2 + attn, v[R_LN1G:R_LN1G + 1, :H], v[R_LN1B:R_LN1B + 1, :H])

    ff = jnp.dot(h1, w1_ref[...], preferred_element_type=jnp.float32) + v[R_B1:R_B1 + 1, :FFN]
    ff = 0.5 * ff * (1.0 + jnp.tanh(0.7978845608028654 *
                                    (ff + 0.044715 * ff * ff * ff)))    # tanh GELU (EUP)
    ff = jnp.dot(ff, w2_ref[...], preferred_element_type=jnp.float32) + v[R_B2:R_B2 + 1, :H]

    enc = layer_norm(h1 + ff, v[R_LN2G:R_LN2G + 1, :H], v[R_LN2B:R_LN2B + 1, :H])  # [G, H]
    # TODO(synk): nn.Dropout is identity at inference; stochastic dropout not applied.

    # -- all three conv branches fused: fixed-shape shifted accumulation -----
    # acc[g, :] = sum_dk enc[g+dk, :] @ w_conv[dk]; the shift is a tiny MXU
    # matmul with an iota-built shift matrix (no unaligned slices), and taps
    # dk >= k_i contribute zero via the zero-padded packed weight.  Invalid
    # trailing / cross-batch positions are removed by the -1e30 pool mask.
    acc = jnp.dot(enc, wconv_ref[0], preferred_element_type=jnp.float32)    # [G, F_TOT]
    row_i = jax.lax.broadcasted_iota(jnp.int32, (G, G), 0)
    col_i = jax.lax.broadcasted_iota(jnp.int32, (G, G), 1)
    for dk in range(1, K_MAX):                                              # static unroll
        shift = (col_i == row_i + dk).astype(jnp.float32)                   # [G, G]
        shifted = jnp.dot(shift, enc, preferred_element_type=jnp.float32)   # enc rows +dk
        acc = acc + jnp.dot(shifted, wconv_ref[dk], preferred_element_type=jnp.float32)

    acc = jnp.maximum(acc + v[R_CONVB:R_CONVB + 1, :F_TOT], 0.0)            # bias + ReLU
    acc3 = acc.reshape(B, S, F_TOT) + v[R_PMASK:R_PMASK + S, :F_TOT]        # mask invalid t
    pooled = jnp.max(acc3, axis=1)                                          # [B, F_TOT]

    # -- classifier + single lane-dense output slab ---------------------------
    fc_w = v[R_FCW:R_FCW + F_TOT, :CLASS_NUM]
    logits = (jnp.dot(pooled, fc_w, preferred_element_type=jnp.float32)
              + v[R_FCB:R_FCB + 1, :CLASS_NUM])
    pad = jnp.zeros((B, OUT_LANES - F_TOT - CLASS_NUM), jnp.float32)
    out_ref[...] = jnp.concatenate([pooled, logits, pad], axis=1)           # one full store


def _vmem():
    return pl.BlockSpec(memory_space=pltpu.MemorySpace.VMEM)


@jax.jit
def transformers_cnn_forward(params, input_ids, attention_masks, text_lengths):
    del text_lengths                       # unused by the reference forward as well
    B, S = input_ids.shape
    ids2 = input_ids.reshape(B * S, 1).astype(jnp.int32)
    mask_f = attention_masks.astype(jnp.float32)

    args = (ids2, mask_f, params['emb'], params['wqkv'], params['wo'],
            params['w1'], params['w2'], params['w_conv'], params['vec_pack'])
    slab = pl.pallas_call(
        _fused_kernel,
        out_shape=jax.ShapeDtypeStruct((B, OUT_LANES), jnp.float32),
        in_specs=[_vmem() for _ in args],
        out_specs=_vmem(),
        # NOTE: no grid needed at these sizes; if B/S ever grow, add a batch
        # grid with dimension_semantics=("parallel",) so both v7x TensorCores
        # are used, and set vmem_limit_bytes explicitly.
    )(*args)

    out_embedding = slab[:, :F_TOT]                     # pooled conv features
    out = slab[:, F_TOT:F_TOT + CLASS_NUM]              # class logits
    return out, out_embedding


# -----------------------------------------------------------------------------
# Parameters (deterministic synthetic init, stored in kernel-ready packed form)
# -----------------------------------------------------------------------------
def init_params(key):
    ks = jax.random.split(key, 20)

    def w(k, shape, scale=0.02):
        return (scale * jax.random.normal(k, shape)).astype(jnp.float32)

    emb = w(ks[0], (VOCAB, HIDDEN))
    wqkv = w(ks[1], (HIDDEN, 3 * HIDDEN))
    wo = w(ks[2], (HIDDEN, HIDDEN))
    w1 = w(ks[3], (HIDDEN, FFN))
    w2 = w(ks[4], (FFN, HIDDEN))

    # conv weights per filter size, zero-padded over the tap index and packed
    # along the filter axis: w_conv[dk, h, i*F + f] == conv_i.weight[f, 0, dk, h]
    w_conv = jnp.zeros((K_MAX, HIDDEN, F_TOT), jnp.float32)
    for i, k in enumerate(FILTER_SIZES):
        wk = w(ks[5 + i], (k, HIDDEN, N_FILTERS), scale=0.1)
        w_conv = w_conv.at[:k, :, i * N_FILTERS:(i + 1) * N_FILTERS].set(wk)

    fc_w = w(ks[8], (F_TOT, CLASS_NUM), scale=0.1)

    bqkv = w(ks[9], (3 * HIDDEN,), scale=0.01)
    bo = w(ks[10], (HIDDEN,), scale=0.01)
    b1 = w(ks[11], (FFN,), scale=0.01)
    b2 = w(ks[12], (HIDDEN,), scale=0.01)
    conv_b = w(ks[13], (F_TOT,), scale=0.01)
    fc_b = w(ks[14], (CLASS_NUM,), scale=0.01)
    ln1_g = jnp.ones((HIDDEN,), jnp.float32)
    ln1_b = jnp.zeros((HIDDEN,), jnp.float32)
    ln2_g = jnp.ones((HIDDEN,), jnp.float32)
    ln2_b = jnp.zeros((HIDDEN,), jnp.float32)

    # pool mask: -1e30 at conv output positions past the valid length S - k + 1
    pmask = np.zeros((SEQ, F_TOT), np.float32)
    for i, k in enumerate(FILTER_SIZES):
        pmask[SEQ - k + 1:, i * N_FILTERS:(i + 1) * N_FILTERS] = -1e30

    vec = jnp.zeros((VEC_ROWS_PAD, OUT_LANES), jnp.float32)
    vec = vec.at[R_BQKV, :3 * HIDDEN].set(bqkv)
    vec = vec.at[R_BO, :HIDDEN].set(bo)
    vec = vec.at[R_LN1G, :HIDDEN].set(ln1_g)
    vec = vec.at[R_LN1B, :HIDDEN].set(ln1_b)
    vec = vec.at[R_B1, :FFN].set(b1)
    vec = vec.at[R_B2, :HIDDEN].set(b2)
    vec = vec.at[R_LN2G, :HIDDEN].set(ln2_g)
    vec = vec.at[R_LN2B, :HIDDEN].set(ln2_b)
    vec = vec.at[R_CONVB, :F_TOT].set(conv_b)
    vec = vec.at[R_FCB, :CLASS_NUM].set(fc_b)
    vec = vec.at[R_PMASK:R_PMASK + SEQ, :F_TOT].set(jnp.asarray(pmask))
    vec = vec.at[R_FCW:R_FCW + F_TOT, :CLASS_NUM].set(fc_w)

    return {'emb': emb, 'wqkv': wqkv, 'wo': wo, 'w1': w1, 'w2': w2,
            'w_conv': w_conv, 'vec_pack': vec}


# -----------------------------------------------------------------------------
# Pure-JAX reference (no Pallas) using the identical packed weights
# -----------------------------------------------------------------------------
def reference_forward(params, input_ids, attention_masks):
    v = params['vec_pack']
    B, S = input_ids.shape
    H = HIDDEN
    x = jnp.take(params['emb'], input_ids.reshape(-1), axis=0)          # [G, H]
    qkv = x @ params['wqkv'] + v[R_BQKV, :3 * H]
    q = qkv[:, 0 * H:1 * H].reshape(B, S, H)
    k = qkv[:, 1 * H:2 * H].reshape(B, S, H)
    val = qkv[:, 2 * H:3 * H].reshape(B, S, H)
    mask = attention_masks.astype(jnp.float32)
    scores = jnp.einsum('bqd,bkd->bqk', q, k) / math.sqrt(H)
    scores = scores + (mask[:, None, :] - 1.0) * 1e9
    p = jax.nn.softmax(scores, axis=-1)
    ctx = jnp.einsum('bqk,bkd->bqd', p, val).reshape(B * S, H)
    attn = ctx @ params['wo'] + v[R_BO, :H]

    def ln(y, g, b):
        mu = y.mean(-1, keepdims=True)
        var = ((y - mu) ** 2).mean(-1, keepdims=True)
        return (y - mu) * jax.lax.rsqrt(var + 1e-5) * g + b

    h1 = ln(x + attn, v[R_LN1G, :H], v[R_LN1B, :H])
    ff = h1 @ params['w1'] + v[R_B1, :FFN]
    ff = 0.5 * ff * (1.0 + jnp.tanh(0.7978845608028654 * (ff + 0.044715 * ff ** 3)))
    ff = ff @ params['w2'] + v[R_B2, :H]
    enc = ln(h1 + ff, v[R_LN2G, :H], v[R_LN2B, :H]).reshape(B, S, H)

    pooled = []
    for i, kk in enumerate(FILTER_SIZES):
        wk = params['w_conv'][:kk, :, i * N_FILTERS:(i + 1) * N_FILTERS]  # [k,H,F]
        bk = v[R_CONVB, i * N_FILTERS:(i + 1) * N_FILTERS]
        L = S - kk + 1
        cols = [jnp.einsum('bkh,khf->bf', enc[:, t:t + kk, :], wk) + bk for t in range(L)]
        conv = jax.nn.relu(jnp.stack(cols, axis=1))                       # [B, L, F]
        pooled.append(jnp.max(conv, axis=1))
    pooled = jnp.concatenate(pooled, axis=1)                              # [B, F_TOT]
    logits = pooled @ v[R_FCW:R_FCW + F_TOT, :CLASS_NUM] + v[R_FCB, :CLASS_NUM]
    return logits, pooled


if __name__ == "__main__":
    key = jax.random.PRNGKey(0)
    pkey, dkey = jax.random.split(key)
    params = init_params(pkey)

    input_ids = jax.random.randint(dkey, (BATCH, SEQ), 0, VOCAB, dtype=jnp.int32)
    attention_masks = jnp.ones((BATCH, SEQ), jnp.int32)
    text_lengths = jnp.full((BATCH,), SEQ, jnp.int32)

    out, out_embedding = transformers_cnn_forward(
        params, input_ids, attention_masks, text_lengths)
    jax.block_until_ready((out, out_embedding))

    assert out.shape == (BATCH, CLASS_NUM)
    assert out_embedding.shape == (BATCH, F_TOT)

    # numerical sanity check against the pure-JAX reference
    ref_out, ref_emb = reference_forward(params, input_ids, attention_masks)
    np.testing.assert_allclose(np.asarray(out), np.asarray(ref_out),
                               rtol=5e-2, atol=5e-3)
    np.testing.assert_allclose(np.asarray(out_embedding), np.asarray(ref_emb),
                               rtol=5e-2, atol=5e-3)

    print("KERNEL_OK")
</pallas_src>

<mosaic_0001>
module attributes {stable_mosaic.version = 11 : i64} {
  func.func @_fused_kernel(%arg0: memref<16x1xi32, #tpu.memory_space<vmem>>, %arg1: memref<2x8xf32, #tpu.memory_space<vmem>>, %arg2: memref<100x32xf32, #tpu.memory_space<vmem>>, %arg3: memref<32x96xf32, #tpu.memory_space<vmem>>, %arg4: memref<32x32xf32, #tpu.memory_space<vmem>>, %arg5: memref<32x64xf32, #tpu.memory_space<vmem>>, %arg6: memref<64x32xf32, #tpu.memory_space<vmem>>, %arg7: memref<4x32x12xf32, #tpu.memory_space<vmem>>, %arg8: memref<32x128xf32, #tpu.memory_space<vmem>>, %arg9: memref<2x128xf32, #tpu.memory_space<vmem>>) attributes {dimension_semantics = [], scalar_prefetch = 0 : i64, scratch_operands = 0 : i64, tpu.core_type = #tpu.core_type<tc>} {
    %c0 = arith.constant 0 : index
    %c0_0 = arith.constant 0 : index
    %0 = vector.load %arg8[%c0, %c0_0] : memref<32x128xf32, #tpu.memory_space<vmem>>, vector<32x128xf32>
    %c0_1 = arith.constant 0 : index
    %c0_2 = arith.constant 0 : index
    %1 = vector.load %arg0[%c0_1, %c0_2] : memref<16x1xi32, #tpu.memory_space<vmem>>, vector<16x1xi32>
    %2 = tpu.iota {dimensions = array<i32: 1>} : vector<16x100xi32>
    %3 = vector.broadcast %1 : vector<16x1xi32> to vector<16x100xi32>
    %4 = arith.cmpi eq, %3, %2 : vector<16x100xi32>
    %5 = arith.extui %4 : vector<16x100xi1> to vector<16x100xi32>
    %6 = arith.sitofp %5 : vector<16x100xi32> to vector<16x100xf32>
    %c0_3 = arith.constant 0 : index
    %c0_4 = arith.constant 0 : index
    %7 = vector.load %arg2[%c0_3, %c0_4] : memref<100x32xf32, #tpu.memory_space<vmem>>, vector<100x32xf32>
    %cst = arith.constant dense<0.000000e+00> : vector<16x32xf32>
    %8 = tpu.matmul %6, %7, %cst {dimension_numbers = #tpu.dot_dimension_numbers<[1], [0], [0], [1], [0, 0, 1, 1], [], []>} : vector<16x100xf32>, vector<100x32xf32>, vector<16x32xf32> -> vector<16x32xf32>
    %c0_5 = arith.constant 0 : index
    %c0_6 = arith.constant 0 : index
    %9 = vector.load %arg3[%c0_5, %c0_6] : memref<32x96xf32, #tpu.memory_space<vmem>>, vector<32x96xf32>
    %cst_7 = arith.constant dense<0.000000e+00> : vector<16x96xf32>
    %10 = tpu.matmul %8, %9, %cst_7 {dimension_numbers = #tpu.dot_dimension_numbers<[1], [0], [0], [1], [0, 0, 1, 1], [], []>} : vector<16x32xf32>, vector<32x96xf32>, vector<16x96xf32> -> vector<16x96xf32>
    %11 = vector.extract_strided_slice %0 {offsets = [0, 0], sizes = [1, 96], strides = [1, 1]} : vector<32x128xf32> to vector<1x96xf32>
    %12 = vector.broadcast %11 : vector<1x96xf32> to vector<16x96xf32>
    %13 = arith.addf %10, %12 : vector<16x96xf32>
    %14 = vector.extract_strided_slice %13 {offsets = [0, 0], sizes = [16, 32], strides = [1, 1]} : vector<16x96xf32> to vector<16x32xf32>
    %15 = vector.shape_cast %14 : vector<16x32xf32> to vector<2x8x32xf32>
    %16 = vector.extract_strided_slice %13 {offsets = [0, 32], sizes = [16, 32], strides = [1, 1]} : vector<16x96xf32> to vector<16x32xf32>
    %17 = vector.shape_cast %16 : vector<16x32xf32> to vector<2x8x32xf32>
    %18 = vector.extract_strided_slice %13 {offsets = [0, 64], sizes = [16, 32], strides = [1, 1]} : vector<16x96xf32> to vector<16x32xf32>
    %19 = vector.shape_cast %18 : vector<16x32xf32> to vector<2x8x32xf32>
    %c0_8 = arith.constant 0 : index
    %c0_9 = arith.constant 0 : index
    %20 = vector.load %arg1[%c0_8, %c0_9] : memref<2x8xf32, #tpu.memory_space<vmem>>, vector<2x8xf32>
    "tpu.trace_start"() <{level = 10 : i32, message = "bqd,bkd->bqk"}> : () -> ()
    %cst_10 = arith.constant dense<0.000000e+00> : vector<2x8x8xf32>
    %21 = tpu.matmul %15, %17, %cst_10 {dimension_numbers = #tpu.dot_dimension_numbers<[2], [2], [1], [1], [0, 0, 0, 1, 1, 1], [0], [0]>} : vector<2x8x32xf32>, vector<2x8x32xf32>, vector<2x8x8xf32> -> vector<2x8x8xf32>
    "tpu.trace_stop"() : () -> ()
    %cst_11 = arith.constant 0.176776692 : f32
    %22 = vector.broadcast %cst_11 : f32 to vector<2x8x8xf32>
    %23 = arith.mulf %21, %22 : vector<2x8x8xf32>
    %24 = vector.shape_cast %20 : vector<2x8xf32> to vector<2x1x8xf32>
    %cst_12 = arith.constant 1.000000e+00 : f32
    %25 = vector.broadcast %cst_12 : f32 to vector<2x1x8xf32>
    %26 = arith.subf %24, %25 : vector<2x1x8xf32>
    %cst_13 = arith.constant 1.000000e+09 : f32
    %27 = vector.broadcast %cst_13 : f32 to vector<2x1x8xf32>
    %28 = arith.mulf %26, %27 : vector<2x1x8xf32>
    %29 = vector.broadcast %28 : vector<2x1x8xf32> to vector<2x8x8xf32>
    %30 = arith.addf %23, %29 : vector<2x8x8xf32>
    %cst_14 = arith.constant dense<0xFF800000> : vector<2x8xf32>
    %31 = vector.multi_reduction <maximumf>, %30, %cst_14 [2] : vector<2x8x8xf32> to vector<2x8xf32>
    %32 = vector.shape_cast %31 : vector<2x8xf32> to vector<2x8x1xf32>
    %33 = vector.broadcast %32 : vector<2x8x1xf32> to vector<2x8x8xf32>
    %34 = arith.subf %30, %33 : vector<2x8x8xf32>
    %35 = math.exp %34 : vector<2x8x8xf32>
    %cst_15 = arith.constant dense<0.000000e+00> : vector<2x8xf32>
    %36 = vector.multi_reduction <add>, %35, %cst_15 [2] : vector<2x8x8xf32> to vector<2x8xf32>
    %37 = vector.shape_cast %36 : vector<2x8xf32> to vector<2x8x1xf32>
    %38 = tpu.reciprocal %37 {approx = true} : vector<2x8x1xf32> -> vector<2x8x1xf32>
    %39 = vector.broadcast %38 : vector<2x8x1xf32> to vector<2x8x8xf32>
    %40 = arith.mulf %35, %39 : vector<2x8x8xf32>
    "tpu.trace_start"() <{level = 10 : i32, message = "bqk,bkd->bqd"}> : () -> ()
    %cst_16 = arith.constant dense<0.000000e+00> : vector<2x8x32xf32>
    %41 = tpu.matmul %40, %19, %cst_16 {dimension_numbers = #tpu.dot_dimension_numbers<[2], [1], [1], [2], [0, 0, 0, 1, 1, 2], [0], [0]>} : vector<2x8x8xf32>, vector<2x8x32xf32>, vector<2x8x32xf32> -> vector<2x8x32xf32>
    "tpu.trace_stop"() : () -> ()
    %42 = vector.shape_cast %41 : vector<2x8x32xf32> to vector<16x32xf32>
    %c0_17 = arith.constant 0 : index
    %c0_18 = arith.constant 0 : index
    %43 = vector.load %arg4[%c0_17, %c0_18] : memref<32x32xf32, #tpu.memory_space<vmem>>, vector<32x32xf32>
    %cst_19 = arith.constant dense<0.000000e+00> : vector<16x32xf32>
    %44 = tpu.matmul %42, %43, %cst_19 {dimension_numbers = #tpu.dot_dimension_numbers<[1], [0], [0], [1], [0, 0, 1, 1], [], []>} : vector<16x32xf32>, vector<32x32xf32>, vector<16x32xf32> -> vector<16x32xf32>
    %45 = vector.extract_strided_slice %0 {offsets = [1, 0], sizes = [1, 32], strides = [1, 1]} : vector<32x128xf32> to vector<1x32xf32>
    %46 = vector.broadcast %45 : vector<1x32xf32> to vector<16x32xf32>
    %47 = arith.addf %44, %46 : vector<16x32xf32>
    %48 = arith.addf %8, %47 : vector<16x32xf32>
    %49 = vector.extract_strided_slice %0 {offsets = [2, 0], sizes = [1, 32], strides = [1, 1]} : vector<32x128xf32> to vector<1x32xf32>
    %50 = vector.extract_strided_slice %0 {offsets = [3, 0], sizes = [1, 32], strides = [1, 1]} : vector<32x128xf32> to vector<1x32xf32>
    %cst_20 = arith.constant dense<0.000000e+00> : vector<16xf32>
    %51 = vector.multi_reduction <add>, %48, %cst_20 [1] : vector<16x32xf32> to vector<16xf32>
    %52 = vector.shape_cast %51 : vector<16xf32> to vector<16x1xf32>
    %cst_21 = arith.constant 3.200000e+01 : f32
    %53 = vector.broadcast %cst_21 : f32 to vector<16x1xf32>
    %54 = arith.divf %52, %53 : vector<16x1xf32>
    %55 = vector.broadcast %54 : vector<16x1xf32> to vector<16x32xf32>
    %56 = arith.subf %48, %55 : vector<16x32xf32>
    %57 = arith.mulf %56, %56 : vector<16x32xf32>
    %cst_22 = arith.constant dense<0.000000e+00> : vector<16xf32>
    %58 = vector.multi_reduction <add>, %57, %cst_22 [1] : vector<16x32xf32> to vector<16xf32>
    %59 = vector.shape_cast %58 : vector<16xf32> to vector<16x1xf32>
    %cst_23 = arith.constant 3.200000e+01 : f32
    %60 = vector.broadcast %cst_23 : f32 to vector<16x1xf32>
    %61 = arith.divf %59, %60 : vector<16x1xf32>
    %62 = vector.broadcast %54 : vector<16x1xf32> to vector<16x32xf32>
    %63 = arith.subf %48, %62 : vector<16x32xf32>
    %cst_24 = arith.constant 9.99999974E-6 : f32
    %64 = vector.broadcast %cst_24 : f32 to vector<16x1xf32>
    %65 = arith.addf %61, %64 : vector<16x1xf32>
    %66 = math.rsqrt %65 : vector<16x1xf32>
    %67 = vector.broadcast %66 : vector<16x1xf32> to vector<16x32xf32>
    %68 = arith.mulf %63, %67 : vector<16x32xf32>
    %69 = vector.broadcast %49 : vector<1x32xf32> to vector<16x32xf32>
    %70 = arith.mulf %68, %69 : vector<16x32xf32>
    %71 = vector.broadcast %50 : vector<1x32xf32> to vector<16x32xf32>
    %72 = arith.addf %70, %71 : vector<16x32xf32>
    %c0_25 = arith.constant 0 : index
    %c0_26 = arith.constant 0 : index
    %73 = vector.load %arg5[%c0_25, %c0_26] : memref<32x64xf32, #tpu.memory_space<vmem>>, vector<32x64xf32>
    %cst_27 = arith.constant dense<0.000000e+00> : vector<16x64xf32>
    %74 = tpu.matmul %72, %73, %cst_27 {dimension_numbers = #tpu.dot_dimension_numbers<[1], [0], [0], [1], [0, 0, 1, 1], [], []>} : vector<16x32xf32>, vector<32x64xf32>, vector<16x64xf32> -> vector<16x64xf32>
    %75 = vector.extract_strided_slice %0 {offsets = [4, 0], sizes = [1, 64], strides = [1, 1]} : vector<32x128xf32> to vector<1x64xf32>
    %76 = vector.broadcast %75 : vector<1x64xf32> to vector<16x64xf32>
    %77 = arith.addf %74, %76 : vector<16x64xf32>
    %cst_28 = arith.constant 5.000000e-01 : f32
    %78 = vector.broadcast %cst_28 : f32 to vector<16x64xf32>
    %79 = arith.mulf %78, %77 : vector<16x64xf32>
    %cst_29 = arith.constant 4.471500e-02 : f32
    %80 = vector.broadcast %cst_29 : f32 to vector<16x64xf32>
    %81 = arith.mulf %80, %77 : vector<16x64xf32>
    %82 = arith.mulf %81, %77 : vector<16x64xf32>
    %83 = arith.mulf %82, %77 : vector<16x64xf32>
    %84 = arith.addf %77, %83 : vector<16x64xf32>
    %cst_30 = arith.constant 0.797884583 : f32
    %85 = vector.broadcast %cst_30 : f32 to vector<16x64xf32>
    %86 = arith.mulf %85, %84 : vector<16x64xf32>
    %87 = math.tanh %86 : vector<16x64xf32>
    %cst_31 = arith.constant 1.000000e+00 : f32
    %88 = vector.broadcast %cst_31 : f32 to vector<16x64xf32>
    %89 = arith.addf %88, %87 : vector<16x64xf32>
    %90 = arith.mulf %79, %89 : vector<16x64xf32>
    %c0_32 = arith.constant 0 : index
    %c0_33 = arith.constant 0 : index
    %91 = vector.load %arg6[%c0_32, %c0_33] : memref<64x32xf32, #tpu.memory_space<vmem>>, vector<64x32xf32>
    %cst_34 = arith.constant dense<0.000000e+00> : vector<16x32xf32>
    %92 = tpu.matmul %90, %91, %cst_34 {dimension_numbers = #tpu.dot_dimension_numbers<[1], [0], [0], [1], [0, 0, 1, 1], [], []>} : vector<16x64xf32>, vector<64x32xf32>, vector<16x32xf32> -> vector<16x32xf32>
    %93 = vector.extract_strided_slice %0 {offsets = [5, 0], sizes = [1, 32], strides = [1, 1]} : vector<32x128xf32> to vector<1x32xf32>
    %94 = vector.broadcast %93 : vector<1x32xf32> to vector<16x32xf32>
    %95 = arith.addf %92, %94 : vector<16x32xf32>
    %96 = arith.addf %72, %95 : vector<16x32xf32>
    %97 = vector.extract_strided_slice %0 {offsets = [6, 0], sizes = [1, 32], strides = [1, 1]} : vector<32x128xf32> to vector<1x32xf32>
    %98 = vector.extract_strided_slice %0 {offsets = [7, 0], sizes = [1, 32], strides = [1, 1]} : vector<32x128xf32> to vector<1x32xf32>
    %cst_35 = arith.constant dense<0.000000e+00> : vector<16xf32>
    %99 = vector.multi_reduction <add>, %96, %cst_35 [1] : vector<16x32xf32> to vector<16xf32>
    %100 = vector.shape_cast %99 : vector<16xf32> to vector<16x1xf32>
    %cst_36 = arith.constant 3.200000e+01 : f32
    %101 = vector.broadcast %cst_36 : f32 to vector<16x1xf32>
    %102 = arith.divf %100, %101 : vector<16x1xf32>
    %103 = vector.broadcast %102 : vector<16x1xf32> to vector<16x32xf32>
    %104 = arith.subf %96, %103 : vector<16x32xf32>
    %105 = arith.mulf %104, %104 : vector<16x32xf32>
    %cst_37 = arith.constant dense<0.000000e+00> : vector<16xf32>
    %106 = vector.multi_reduction <add>, %105, %cst_37 [1] : vector<16x32xf32> to vector<16xf32>
    %107 = vector.shape_cast %106 : vector<16xf32> to vector<16x1xf32>
    %cst_38 = arith.constant 3.200000e+01 : f32
    %108 = vector.broadcast %cst_38 : f32 to vector<16x1xf32>
    %109 = arith.divf %107, %108 : vector<16x1xf32>
    %110 = vector.broadcast %102 : vector<16x1xf32> to vector<16x32xf32>
    %111 = arith.subf %96, %110 : vector<16x32xf32>
    %cst_39 = arith.constant 9.99999974E-6 : f32
    %112 = vector.broadcast %cst_39 : f32 to vector<16x1xf32>
    %113 = arith.addf %109, %112 : vector<16x1xf32>
    %114 = math.rsqrt %113 : vector<16x1xf32>
    %115 = vector.broadcast %114 : vector<16x1xf32> to vector<16x32xf32>
    %116 = arith.mulf %111, %115 : vector<16x32xf32>
    %117 = vector.broadcast %97 : vector<1x32xf32> to vector<16x32xf32>
    %118 = arith.mulf %116, %117 : vector<16x32xf32>
    %119 = vector.broadcast %98 : vector<1x32xf32> to vector<16x32xf32>
    %120 = arith.addf %118, %119 : vector<16x32xf32>
    %c0_40 = arith.constant 0 : index
    %c0_41 = arith.constant 0 : index
    %c0_42 = arith.constant 0 : index
    %121 = vector.load %arg7[%c0_40, %c0_41, %c0_42] : memref<4x32x12xf32, #tpu.memory_space<vmem>>, vector<1x32x12xf32>
    %122 = vector.shape_cast %121 : vector<1x32x12xf32> to vector<32x12xf32>
    %cst_43 = arith.constant dense<0.000000e+00> : vector<16x12xf32>
    %123 = tpu.matmul %120, %122, %cst_43 {dimension_numbers = #tpu.dot_dimension_numbers<[1], [0], [0], [1], [0, 0, 1, 1], [], []>} : vector<16x32xf32>, vector<32x12xf32>, vector<16x12xf32> -> vector<16x12xf32>
    %124 = tpu.iota {dimensions = array<i32: 0>} : vector<16x16xi32>
    %125 = tpu.iota {dimensions = array<i32: 1>} : vector<16x16xi32>
    %c1_i32 = arith.constant 1 : i32
    %126 = vector.broadcast %c1_i32 : i32 to vector<16x16xi32>
    %127 = arith.addi %124, %126 : vector<16x16xi32>
    %128 = arith.cmpi eq, %125, %127 : vector<16x16xi32>
    %129 = arith.extui %128 : vector<16x16xi1> to vector<16x16xi32>
    %130 = arith.sitofp %129 : vector<16x16xi32> to vector<16x16xf32>
    %cst_44 = arith.constant dense<0.000000e+00> : vector<16x32xf32>
    %131 = tpu.matmul %130, %120, %cst_44 {dimension_numbers = #tpu.dot_dimension_numbers<[1], [0], [0], [1], [0, 0, 1, 1], [], []>} : vector<16x16xf32>, vector<16x32xf32>, vector<16x32xf32> -> vector<16x32xf32>
    %c1 = arith.constant 1 : index
    %c0_45 = arith.constant 0 : index
    %c0_46 = arith.constant 0 : index
    %132 = vector.load %arg7[%c1, %c0_45, %c0_46] : memref<4x32x12xf32, #tpu.memory_space<vmem>>, vector<1x32x12xf32>
    %133 = vector.shape_cast %132 : vector<1x32x12xf32> to vector<32x12xf32>
    %cst_47 = arith.constant dense<0.000000e+00> : vector<16x12xf32>
    %134 = tpu.matmul %131, %133, %cst_47 {dimension_numbers = #tpu.dot_dimension_numbers<[1], [0], [0], [1], [0, 0, 1, 1], [], []>} : vector<16x32xf32>, vector<32x12xf32>, vector<16x12xf32> -> vector<16x12xf32>
    %135 = arith.addf %123, %134 : vector<16x12xf32>
    %c2_i32 = arith.constant 2 : i32
    %136 = vector.broadcast %c2_i32 : i32 to vector<16x16xi32>
    %137 = arith.addi %124, %136 : vector<16x16xi32>
    %138 = arith.cmpi eq, %125, %137 : vector<16x16xi32>
    %139 = arith.extui %138 : vector<16x16xi1> to vector<16x16xi32>
    %140 = arith.sitofp %139 : vector<16x16xi32> to vector<16x16xf32>
    %cst_48 = arith.constant dense<0.000000e+00> : vector<16x32xf32>
    %141 = tpu.matmul %140, %120, %cst_48 {dimension_numbers = #tpu.dot_dimension_numbers<[1], [0], [0], [1], [0, 0, 1, 1], [], []>} : vector<16x16xf32>, vector<16x32xf32>, vector<16x32xf32> -> vector<16x32xf32>
    %c2 = arith.constant 2 : index
    %c0_49 = arith.constant 0 : index
    %c0_50 = arith.constant 0 : index
    %142 = vector.load %arg7[%c2, %c0_49, %c0_50] : memref<4x32x12xf32, #tpu.memory_space<vmem>>, vector<1x32x12xf32>
    %143 = vector.shape_cast %142 : vector<1x32x12xf32> to vector<32x12xf32>
    %cst_51 = arith.constant dense<0.000000e+00> : vector<16x12xf32>
    %144 = tpu.matmul %141, %143, %cst_51 {dimension_numbers = #tpu.dot_dimension_numbers<[1], [0], [0], [1], [0, 0, 1, 1], [], []>} : vector<16x32xf32>, vector<32x12xf32>, vector<16x12xf32> -> vector<16x12xf32>
    %145 = arith.addf %135, %144 : vector<16x12xf32>
    %c3_i32 = arith.constant 3 : i32
    %146 = vector.broadcast %c3_i32 : i32 to vector<16x16xi32>
    %147 = arith.addi %124, %146 : vector<16x16xi32>
    %148 = arith.cmpi eq, %125, %147 : vector<16x16xi32>
    %149 = arith.extui %148 : vector<16x16xi1> to vector<16x16xi32>
    %150 = arith.sitofp %149 : vector<16x16xi32> to vector<16x16xf32>
    %cst_52 = arith.constant dense<0.000000e+00> : vector<16x32xf32>
    %151 = tpu.matmul %150, %120, %cst_52 {dimension_numbers = #tpu.dot_dimension_numbers<[1], [0], [0], [1], [0, 0, 1, 1], [], []>} : vector<16x16xf32>, vector<16x32xf32>, vector<16x32xf32> -> vector<16x32xf32>
    %c3 = arith.constant 3 : index
    %c0_53 = arith.constant 0 : index
    %c0_54 = arith.constant 0 : index
    %152 = vector.load %arg7[%c3, %c0_53, %c0_54] : memref<4x32x12xf32, #tpu.memory_space<vmem>>, vector<1x32x12xf32>
    %153 = vector.shape_cast %152 : vector<1x32x12xf32> to vector<32x12xf32>
    %cst_55 = arith.constant dense<0.000000e+00> : vector<16x12xf32>
    %154 = tpu.matmul %151, %153, %cst_55 {dimension_numbers = #tpu.dot_dimension_numbers<[1], [0], [0], [1], [0, 0, 1, 1], [], []>} : vector<16x32xf32>, vector<32x12xf32>, vector<16x12xf32> -> vector<16x12xf32>
    %155 = arith.addf %145, %154 : vector<16x12xf32>
    %156 = vector.extract_strided_slice %0 {offsets = [8, 0], sizes = [1, 12], strides = [1, 1]} : vector<32x128xf32> to vector<1x12xf32>
    %157 = vector.broadcast %156 : vector<1x12xf32> to vector<16x12xf32>
    %158 = arith.addf %155, %157 : vector<16x12xf32>
    %cst_56 = arith.constant 0.000000e+00 : f32
    %159 = vector.broadcast %cst_56 : f32 to vector<16x12xf32>
    %160 = arith.maximumf %158, %159 : vector<16x12xf32>
    %161 = vector.shape_cast %160 : vector<16x12xf32> to vector<2x8x12xf32>
    %162 = vector.extract_strided_slice %0 {offsets = [10, 0], sizes = [8, 12], strides = [1, 1]} : vector<32x128xf32> to vector<8x12xf32>
    %163 = vector.shape_cast %162 : vector<8x12xf32> to vector<1x8x12xf32>
    %164 = vector.broadcast %163 : vector<1x8x12xf32> to vector<2x8x12xf32>
    %165 = arith.addf %161, %164 : vector<2x8x12xf32>
    %cst_57 = arith.constant dense<0xFF800000> : vector<2x12xf32>
    %166 = vector.multi_reduction <maximumf>, %165, %cst_57 [1] : vector<2x8x12xf32> to vector<2x12xf32>
    %167 = vector.extract_strided_slice %0 {offsets = [18, 0], sizes = [12, 5], strides = [1, 1]} : vector<32x128xf32> to vector<12x5xf32>
    %cst_58 = arith.constant dense<0.000000e+00> : vector<2x5xf32>
    %168 = tpu.matmul %166, %167, %cst_58 {dimension_numbers = #tpu.dot_dimension_numbers<[1], [0], [0], [1], [0, 0, 1, 1], [], []>} : vector<2x12xf32>, vector<12x5xf32>, vector<2x5xf32> -> vector<2x5xf32>
    %169 = vector.extract_strided_slice %0 {offsets = [9, 0], sizes = [1, 5], strides = [1, 1]} : vector<32x128xf32> to vector<1x5xf32>
    %170 = vector.broadcast %169 : vector<1x5xf32> to vector<2x5xf32>
    %171 = arith.addf %168, %170 : vector<2x5xf32>
    %cst_59 = arith.constant 0.000000e+00 : f32
    %172 = vector.broadcast %cst_59 : f32 to vector<2x111xf32>
    %173 = tpu.concatenate %166, %171, %172 in 1 : vector<2x12xf32>, vector<2x5xf32>, vector<2x111xf32> -> vector<2x128xf32>
    %c0_60 = arith.constant 0 : index
    %c0_61 = arith.constant 0 : index
    %174 = vector.load %arg9[%c0_60, %c0_61] : memref<2x128xf32, #tpu.memory_space<vmem>>, vector<2x128xf32>
    tpu.vector_store %arg9[%c0_60, %c0_61], %173 {strides = array<i32>} : memref<2x128xf32, #tpu.memory_space<vmem>>, vector<2x128xf32>,
    return
  }
}

</mosaic_0001>

<bundles_post_ra>
// kernel: transformers_cnn_forward.1
= control target key start
LH: loop header
LB: loop body
LE: loop exit
PB: predicated region body
PF: predicated region fallthrough
CT: control target
= control target key end

     0   :  { %v2203_v0 = vmov 0   ;;  %v2204_v26 = vmov 0.0   ;;  %vm72_vm0 = vcmask 1043456   ;;  %v38_v29 = vlaneseq  ;;  %s2206_s25 = smov 96   ;;  %s2553_s0 = inlined_call_operand.vmem [shape: s32[16,1], index: 0, kind: input, shape index: {}]   ;;  %s2554_s2 = inlined_call_operand.vmem [shape: f32[100,32], index: 2, kind: input, shape index: {}]   ;;  %s2555_s3 = inlined_call_operand.vmem [shape: f32[32,96], index: 3, kind: input, shape index: {}]   ;;  %s2556_s8 = inlined_call_operand.vmem [shape: f32[32,128], index: 8, kind: input, shape index: {}]   ;;  %s2557_s1 = inlined_call_operand.vmem [shape: f32[2,8], index: 1, kind: input, shape index: {}]   ;;  %s2558_s4 = inlined_call_operand.vmem [shape: f32[32,32], index: 4, kind: input, shape index: {}]   ;;  %s2559_s5 = inlined_call_operand.vmem [shape: f32[32,64], index: 5, kind: input, shape index: {}]   ;;  %s2560_s6 = inlined_call_operand.vmem [shape: f32[64,32], index: 6, kind: input, shape index: {}]   ;;  %s2561_s7 = inlined_call_operand.vmem [shape: f32[4,32,12], index: 7, kind: input, shape index: {}]   ;;  %s2562_s9 = inlined_call_operand.vmem [shape: f32[2,128], index: 9, kind: output, shape index: {}]  }
   0x1   :  { %2182 = vset.pattern.permute.xlu0 %v2203_v0  ;;  %v36_v1 = vld [vmem:[%s2553_s0] sm:$0xff]  ;;  %v53_v3 = vld [vmem:[%s2554_s2 + $0x8] sm:$0xff]  ;;  %v54_v4 = vld [vmem:[%s2554_s2 + $0x10] sm:$0xff]  ;;  %vm65_vm1 = vcmask 818176   ;;  %vm159_vm4 = vcmask 261120   ;;  %vm2205_vm5 = vmmov 0  }
   0x2   :  { %v52_v2 = vld [vmem:[%s2554_s2] sm:$0xff]  ;;  %41 = vperm.xlu0 %2182, %v36_v1   ;;  %v55_v5 = vld [vmem:[%s2554_s2 + $0x18] sm:$0xff]  ;;  %v37_v6 = vld [vmem:[%s2553_s0 + $0x8] sm:$0xff]  ;;  %v2322_v30 = vand.u32 127, %v38_v29  ;;  %v2336_v37 = vshrl.u32 %v38_v29, 7  ;;  %vm441_vm6 = vcmask 64512  }
   0x3   :  { %v2055_v7 = vpack.c.bf16 %v53_v3, %v52_v2  ;;  %v2059_v8 = vpack.c.bf16 %v55_v5, %v54_v4  ;;  %v56_v9 = vld [vmem:[%s2554_s2 + $0x20] sm:$0xff]  ;;  %v57_v10 = vld [vmem:[%s2554_s2 + $0x28] sm:$0xff]  ;;  %v58_v12 = vld [vmem:[%s2554_s2 + $0x30] sm:$0xff]  ;;  %v2207_v47 = vmov 1966171168   ;;  %vm865_vm7 = vcmask 523264  }
   0x4   :  { %v2063_v11 = vpack.c.bf16 %v57_v10, %v56_v9  ;;  %v59_v13 = vld [vmem:[%s2554_s2 + $0x38] sm:$0xff]  ;;  %v151_v14 = vld [vmem:[%s2555_s3] sm:$0xff]  ;;  %v152_v15 = vld [vmem:[%s2555_s3 + $0x8] sm:$0xff]  ;;  %v2341_v38 = vsub.s32 0, %v2336_v37  ;;  %v408_v48 = vunpack.c.l.s4 %v2207_v47  ;;  %vm1002_vm9 = vcmask 130048  }
   0x5   :  { %2056 = vmatprep.subr.bf16.mxu0 %v2055_v7  ;;  %v153_v16 = vld [vmem:[%s2555_s3 + $0x10] sm:$0xff]  ;;  %v2079_v17 = vpack.c.bf16 %v152_v15, %v151_v14  ;;  %v154_v18 = vld [vmem:[%s2555_s3 + $0x18] sm:$0xff]  ;;  %v2067_v19 = vpack.c.bf16 %v59_v13, %v58_v12  ;;  %v60_v21 = vld [vmem:[%s2554_s2 + $0x40] sm:$0xff]  ;;  %vm1615_vm15 = vcmask 1045504  }
   0x6   :  { %44 = vperm.xlu0 %2182, %v37_v6   ;;  %2058 = vmatpush3.bf16.msra.mxu0 %v2055_v7  ;;  %v2083_v20 = vpack.c.bf16 %v154_v18, %v153_v16  ;;  %v61_v22 = vld [vmem:[%s2554_s2 + $0x48] sm:$0xff]  ;;  %v62_v24 = vld [vmem:[%s2554_s2 + $0x50] sm:$0xff]  ;;  %v63_v25 = vld [vmem:[%s2554_s2 + $0x58] sm:$0xff]  ;;  %v409_v49 = vunpack.c.0.s8 %v408_v48 }
   0x7   :  { %2060 = vmatprep.subr.bf16.mxu0 %v2059_v8  ;;  %2080 = vmatprep.subr.bf16.mxu1 %v2079_v17  ;;  %v2071_v23 = vpack.c.bf16 %v61_v22, %v60_v21  ;;  %v2075_v27 = vpack.c.bf16 %v63_v25, %v62_v24  ;;  %v64_v28 = vld [vmem:[%s2554_s2 + $0x60] sm:$0xf]  ;;  %v617_v21 = vld [vmem:[%s2558_s4 + $0x8] sm:$0xff]  ;;  %v618_v29 = vld [vmem:[%s2558_s4 + $0x10] sm:$0xff] }
   0x8   :  { %2082 = vmatpush3.bf16.msra.mxu1 %v2079_v17  ;;  %v2346_v39 = vld [vmem:[%s2556_s8] sm:$0xff]  ;;  %v412_v50 = vsub.s32 %v409_v49, %v2336_v37 }
   0x9   :  { %2084 = vmatprep.subr.bf16.mxu1 %v2083_v20  ;;  %v158_v40 = vrot.slane %v2346_v39, %v2341_v38  ;;  %v1747_v51 = vld.sshfl [vmem:[%s2557_s1] sm:$0x11 pattern:$0x75316420]  ;;  %s2208_s1 = smov 64  }
   0xa   :  { %2062 = vmatpush3.bf16.msra.mxu0 %v2059_v8  ;;  %v413_v52 = vrot.slane %v1747_v51, %v412_v50  ;;  %v406_v53 = vcombine.high %v1747_v51, %v1747_v51 }
   0xb   :  { %2064 = vmatprep.subr.bf16.mxu0 %v2063_v11 }
   0xc   :  { %2086 = vmatpush3.bf16.msra.mxu1 %v2083_v20  ;;  %v1748_v54 = vadd.f32 -1.0, %v413_v52  ;;  %v420_v55 = vrot.slane %v406_v53, %v412_v50  ;;  %v616_v20 = vld [vmem:[%s2558_s4] sm:$0xff] }
   0xd   :  { %1922 = vmatprep.subr.mxu1 %v2204_v26  ;;  %v2087_v24 = vpack.c.bf16 %v617_v21, %v616_v20  ;;  %v853_v20 = vld [vmem:[%s2560_s6] sm:$0xff]  ;;  %v854_v21 = vld [vmem:[%s2560_s6 + $0x8] sm:$0xff] }
   0xe   :  { %2066 = vmatpush3.bf16.msra.mxu0 %v2063_v11  ;;  %v425_v56 = vmul.f32 1e+09, %v1748_v54  ;;  %v1749_v57 = vadd.f32 -1.0, %v420_v55 }
   0xf   :  { %2068 = vmatprep.subr.bf16.mxu0 %v2067_v19 }
  0x10   :  { %v432_v58 = vrot.slane %v425_v56, %v2341_v38  ;;  %v426_v59 = vmul.f32 1e+09, %v1749_v57 }
  0x12   :  { %2070 = vmatpush3.bf16.msra.mxu0 %v2067_v19  ;;  %v436_v0 = vrot.slane %v426_v59, %v2341_v38 }
  0x13   :  { %2072 = vmatprep.subr.bf16.mxu0 %v2071_v23 }
  0x16   :  { %2074 = vmatpush3.bf16.msra.mxu0 %v2071_v23 }
  0x17   :  { %2076 = vmatprep.subr.bf16.mxu0 %v2075_v27 }
  0x1a   :  { %2078 = vmatpush3.bf16.msra.mxu0 %v2075_v27 }
  0x1b   :  { %1906 = vmatprep.subr.msk.mxu0 %vm72_vm0, %v64_v28 }
  0x1e   :  { %1907 = vmatpush3.msk.msra.mxu0 %vm72_vm0, %v64_v28 }
  0x81   :  { %v42_v31 = vpop.permute.xlu0 %41 }
  0x82   :  { %vm46_vm2 = vcmp.eq.s32.totalorder %v42_v31, %v2322_v30  ;;  %v619_v31 = vld [vmem:[%s2558_s4 + $0x18] sm:$0xff] }
  0x83   :  { %v1736_v32 = vsel %vm46_vm2, 1.0, %v2204_v26 }
  0x84   :  { %1908 = vmatprep.mubr.msk.f32.mxu0 %vm65_vm1, %v1736_v32  ;;  %v2091_v32 = vpack.c.bf16 %v619_v31, %v618_v29  ;;  %v859_v31 = vld [vmem:[%s2560_s6 + $0x30] sm:$0xff] }
  0x85   :  { %v45_v33 = vpop.permute.xlu0 %44 }
  0x86   :  { %vm47_vm3 = vcmp.eq.s32.totalorder %v45_v33, %v2322_v30 }
  0x87   :  { %v1737_v34 = vsel %vm47_vm3, 1.0, %v2204_v26  ;;  %vm1622_vm3 = vcmask 97280  }
  0x88   :  { %1909 = vmatmul.mubr.msk.f32.vlgmr.msra.gmra.mrb[0].mxu0 %vm65_vm1, %v1737_v34  ;;  %vm2210_vm1 = vmmov 1  }
  0x89   :  { %vm2165_vm2 = vmpackc.low %vm72_vm0, %vm2210_vm1  ;;  %vm1643_vm0 = vcmask 1041409  }
 0x15b   :  { %v2328_v35 = vpop.f32.mrb[0].mxu0 }
 0x15c   :  { %v2330_v36 = vpop.f32.mrb[1].mxu0 }
 0x15d   :  { %1919 = vmatprep.mubr.msk.f32.mxu1 %vm159_vm4, %v2330_v36 }
 0x15e   :  { %1920 = vmatmul.mubr.msk.f32.vlgmr.msra.gmra.mrb[0].mxu1 %vm159_vm4, %v2328_v35 }
 0x15f   :  { %1924 = vmatprep.mubr.msk.f32.mxu1 %vm2205_vm5, %v2204_v26 }
 0x231   :  { %v1921_v41 = vpop.f32.mrb[0].mxu1 }
 0x232   :  { %v232_v42 = vpop.f32.mrb[1].mxu1  ;;  %v238_v44 = vadd.f32 %v1921_v41, %v158_v40 }
 0x233   :  { %v233_v43 = vadd.f32 %v232_v42, %v158_v40  ;;  %v622_v42 = vsub.s32 1, %v2336_v37 }
 0x235   :  { %243 = vrot.lane.b32.xlu1 %v233_v43, %s2206_s25 }
 0x239   :  { %320 = vrot.lane.b32.xlu1 %v238_v44, %s2206_s25 }
 0x2a7   :  { %v244_v45 = vpop.permute.xlu1 %243 }
 0x2a8   :  { %1923 = vmatpush3.xpose.msk.msra.mxu1 %vm159_vm4, %v244_v45 }
 0x2a9   :  { %1927 = vmatprep.subr.mxu1 %v2204_v26 }
 0x2ab   :  { %1925 = vmatmul.mubr.msk.f32.vlgmr.msra.gmra.mrb[2].mxu1 %vm159_vm4, %v233_v43  ;;  %v321_v46 = vpop.permute.xlu1 %320 }
 0x2ac   :  { %1928 = vmatpush3.xpose.msk.msra.mxu1 %vm159_vm4, %v321_v46  ;;  %1929 = vmatprep.mubr.msk.f32.mxu1 %vm2205_vm5, %v2204_v26 }
 0x2ad   :  { %1932 = vmatprep.subr.mxu1 %v2204_v26 }
 0x2af   :  { %1930 = vmatmul.mubr.msk.f32.vlgmr.msra.gmra.mrb[4].mxu1 %vm159_vm4, %v238_v44 }
 0x2b0   :  { %1934 = vmatprep.mubr.msk.f32.mxu1 %vm2205_vm5, %v2204_v26 }
 0x37e   :  { %v315_v60 = vpop.f32.mrb[2].mxu1 }
 0x37f   :  { %v396_v61 = vmul.f32 0.17677669, %v315_v60  ;;  %v1926_v62 = vpop.f32.mrb[3].mxu1 }
 0x381   :  { %v439_v63 = vadd.f32 %v432_v58, %v396_v61  ;;  %v747_v61 = vld [vmem:[%s2559_s5 + $0x8] sm:$0xff] }
 0x382   :  { %v392_v1 = vpop.f32.mrb[4].mxu1 }
 0x383   :  { %v397_v2 = vmul.f32 0.17677669, %v392_v1  ;;  %v1931_v3 = vpop.f32.mrb[5].mxu1  ;;  %v442_v4 = vsel %vm441_vm6, %v439_v63, -inf }
 0x384   :  { %443 = vmax.xlane.f32.xlu0 %v442_v4 }
 0x385   :  { %v440_v5 = vadd.f32 %v436_v0, %v397_v2  ;;  %v749_v0 = vld [vmem:[%s2559_s5 + $0x18] sm:$0xff] }
 0x387   :  { %v445_v6 = vsel %vm441_vm6, %v440_v5, -inf }
 0x388   :  { %446 = vmax.xlane.f32.xlu1 %v445_v6 }
 0x399   :  { %464 = vrot.lane.b32.xlu1 %v233_v43, %s2208_s1  ;;  %v623_v43 = vrot.slane %v2346_v39, %v622_v42 }
 0x411   :  { %v444_v7 = vpop.xlane.xlu0 %443 }
 0x412   :  { %v448_v8 = vsub.f32 %v439_v63, %v444_v7  ;;  %v748_v63 = vld [vmem:[%s2559_s5 + $0x10] sm:$0xff] }
 0x413   :  { %v2099_v1 = vpack.c.bf16 %v749_v0, %v748_v63 }
 0x414   :  { %v450_v9 = vmul.f32 1.442695, %v448_v8  ;;  %v736_v8 = vsub.s32 2, %v2336_v37 }
 0x415   :  { %v447_v10 = vpop.xlane.xlu1 %446 }
 0x416   :  { %2183 = vpow2.f32 %v450_v9  ;;  %v449_v11 = vsub.f32 %v440_v5, %v447_v10  ;;  %v742_v9 = vsub.s32 3, %v2336_v37  ;;  %v737_v10 = vrot.slane %v2346_v39, %v736_v8 }
 0x418   :  { %v452_v12 = vmul.f32 1.442695, %v449_v11 }
 0x419   :  { %v465_v13 = vpop.permute.xlu1 %464 }
 0x41a   :  { %2185 = vpow2.f32 %v452_v12  ;;  %1933 = vmatpush3.msra.mxu1 %v465_v13 }
 0x41b   :  { %1937 = vmatprep.subr.mxu1 %v2204_v26 }
 0x420   :  { %v2184_v14 = vpop.eup %2183 }
 0x421   :  { %v454_v15 = vsel %vm441_vm6, %v2184_v14, 0.0 }
 0x422   :  { %455 = vadd.xlane.f32.xlu0 %v454_v15  ;;  %v743_v15 = vrot.slane %v2346_v39, %v742_v9 }
 0x424   :  { %v2186_v16 = vpop.eup %2185 }
 0x425   :  { %v457_v17 = vsel %vm441_vm6, %v2186_v16, 0.0 }
 0x426   :  { %458 = vadd.xlane.f32.xlu0 %v457_v17 }
 0x43c   :  { %540 = vrot.lane.b32.xlu0 %v238_v44, %s2208_s1 }
 0x4af   :  { %v456_v18 = vpop.xlane.xlu0 %455 }
 0x4b0   :  { %2187 = vrcp.f32 %v456_v18 }
 0x4b3   :  { %v459_v19 = vpop.xlane.xlu0 %458 }
 0x4b4   :  { %2189 = vrcp.f32 %v459_v19 }
 0x4b7   :  { %v541_v25 = vpop.permute.xlu0 %540 }
 0x4ba   :  { %v2188_v22 = vpop.eup %2187 }
 0x4bb   :  { %v462_v23 = vmul.f32 %v2188_v22, %v2184_v14  ;;  %v2103_v22 = vpack.c.bf16 %v854_v21, %v853_v20  ;;  %v1762_v20 = vld [vmem:[%s2561_s7 + $0x20] sm:$0xff]  ;;  %v1763_v21 = vld [vmem:[%s2561_s7 + $0x28] sm:$0xff] }
 0x4bd   :  { %1935 = vmatmul.mubr.msk.f32.vlgmr.msra.gmra.mrb[6].mxu1 %vm441_vm6, %v462_v23  ;;  %v855_v23 = vld [vmem:[%s2560_s6 + $0x10] sm:$0xff] }
 0x4be   :  { %v2190_v27 = vpop.eup %2189  ;;  %1938 = vmatpush3.msra.mxu1 %v541_v25  ;;  %1939 = vmatprep.mubr.msk.f32.mxu1 %vm2205_vm5, %v2204_v26 }
 0x4bf   :  { %v463_v28 = vmul.f32 %v2190_v27, %v2186_v16  ;;  %2088 = vmatprep.subr.bf16.mxu1 %v2087_v24  ;;  %v857_v27 = vld [vmem:[%s2560_s6 + $0x20] sm:$0xff] }
 0x4c1   :  { %1940 = vmatmul.mubr.msk.f32.vlgmr.msra.gmra.mrb[8].mxu1 %vm441_vm6, %v463_v28  ;;  %v858_v28 = vld [vmem:[%s2560_s6 + $0x28] sm:$0xff] }
 0x4c2   :  { %2090 = vmatpush3.bf16.msra.mxu1 %v2087_v24  ;;  %v856_v24 = vld [vmem:[%s2560_s6 + $0x18] sm:$0xff]  ;;  %v2111_v29 = vpack.c.bf16 %v858_v28, %v857_v27 }
 0x4c3   :  { %2092 = vmatprep.subr.bf16.mxu1 %v2091_v32  ;;  %v2107_v25 = vpack.c.bf16 %v856_v24, %v855_v23  ;;  %v2123_v23 = vpack.c.bf16 %v1763_v21, %v1762_v20  ;;  %v1765_v24 = vld [vmem:[%s2561_s7 + $0x38] sm:$0xff]  ;;  %v33_v20 = vld [vmem:[%s2556_s8 + $0x8] sm:$0xff] }
 0x4c4   :  { %v1616_v21 = vrot.slane %v33_v20, 2 }
 0x4c6   :  { %2094 = vmatpush3.bf16.msra.mxu1 %v2091_v32  ;;  %v860_v32 = vld [vmem:[%s2560_s6 + $0x38] sm:$0xff] }
 0x4c7   :  { %2104 = vmatprep.subr.bf16.mxu1 %v2103_v22 }
 0x590   :  { %v536_v33 = vpop.f32.mrb[6].mxu1 }
 0x591   :  { %v1936_v34 = vpop.f32.mrb[7].mxu1  ;;  %1950 = vmatprep.mubr.msk.f32.mxu1 %vm159_vm4, %v536_v33  ;;  %v2115_v33 = vpack.c.bf16 %v860_v32, %v859_v31 }
 0x592   :  { %v752_v34 = vsub.s32 4, %v2336_v37 }
 0x594   :  { %v612_v40 = vpop.f32.mrb[8].mxu1 }
 0x595   :  { %v1941_v41 = vpop.f32.mrb[9].mxu1  ;;  %1951 = vmatmul.mubr.msk.f32.vlgmr.msra.gmra.mrb[10].mxu1 %vm159_vm4, %v612_v40  ;;  %v753_v40 = vrot.slane %v2346_v39, %v752_v34  ;;  %v977_v34 = vsub.s32 6, %v2336_v37 }
 0x596   :  { %2106 = vmatpush3.bf16.msra.mxu1 %v2103_v22  ;;  %v1764_v22 = vld [vmem:[%s2561_s7 + $0x30] sm:$0xff] }
 0x597   :  { %2108 = vmatprep.subr.bf16.mxu1 %v2107_v25 }
 0x59a   :  { %2110 = vmatpush3.bf16.msra.mxu1 %v2107_v25  ;;  %v2127_v25 = vpack.c.bf16 %v1765_v24, %v1764_v22  ;;  %v35_v24 = vld [vmem:[%s2556_s8 + $0x18] sm:$0xff] }
 0x59b   :  { %2112 = vmatprep.subr.bf16.mxu1 %v2111_v29 }
 0x59e   :  { %2114 = vmatpush3.bf16.msra.mxu1 %v2111_v29 }
 0x59f   :  { %2116 = vmatprep.subr.bf16.mxu1 %v2115_v33 }
 0x5a2   :  { %2118 = vmatpush3.bf16.msra.mxu1 %v2115_v33 }
 0x668   :  { %v1952_v44 = vpop.f32.mrb[10].mxu1 }
 0x669   :  { %v702_v45 = vadd.f32 %v1952_v44, %v623_v43  ;;  %v696_v46 = vpop.f32.mrb[11].mxu1 }
 0x66a   :  { %v697_v47 = vadd.f32 %v696_v46, %v623_v43 }
 0x66b   :  { %v706_v48 = vadd.f32 %v2328_v35, %v702_v45 }
 0x66c   :  { %v705_v49 = vadd.f32 %v697_v47, %v2330_v36  ;;  %v746_v36 = vld [vmem:[%s2559_s5] sm:$0xff] }
 0x66d   :  { %v710_v50 = vsel %vm159_vm4, %v706_v48, 0.0  ;;  %v2095_v62 = vpack.c.bf16 %v747_v61, %v746_v36 }
 0x66e   :  { %711 = vadd.xlane.f32.xlu0 %v710_v50  ;;  %v707_v51 = vsel %vm159_vm4, %v705_v49, 0.0 }
 0x66f   :  { %708 = vadd.xlane.f32.xlu1 %v707_v51  ;;  %2096 = vmatprep.subr.bf16.mxu0 %v2095_v62 }
 0x670   :  { %2098 = vmatpush3.bf16.msra.mxu0 %v2095_v62  ;;  %v863_v62 = vsub.s32 5, %v2336_v37 }
 0x671   :  { %2100 = vmatprep.subr.bf16.mxu0 %v2099_v1 }
 0x672   :  { %v864_v63 = vrot.slane %v2346_v39, %v863_v62 }
 0x674   :  { %2102 = vmatpush3.bf16.msra.mxu0 %v2099_v1 }
 0x675   :  { %2124 = vmatprep.subr.bf16.mxu0 %v2123_v23 }
 0x6fb   :  { %v712_v52 = vpop.xlane.xlu0 %711 }
 0x6fc   :  { %v715_v53 = vmul.f32 0.03125, %v712_v52  ;;  %v709_v54 = vpop.xlane.xlu1 %708 }
 0x6fd   :  { %v714_v55 = vmul.f32 0.03125, %v709_v54 }
 0x6fe   :  { %v717_v56 = vsub.f32 %v706_v48, %v715_v53 }
 0x6ff   :  { %v716_v57 = vsub.f32 %v705_v49, %v714_v55 }
 0x700   :  { %v719_v58 = vmul.f32 %v717_v56, %v717_v56 }
 0x701   :  { %v718_v59 = vmul.f32 %v716_v57, %v716_v57 }
 0x702   :  { %v723_v60 = vsel %vm159_vm4, %v719_v58, 0.0 }
 0x703   :  { %724 = vadd.xlane.f32.xlu0 %v723_v60  ;;  %v720_v35 = vsel %vm159_vm4, %v718_v59, 0.0 }
 0x704   :  { %721 = vadd.xlane.f32.xlu1 %v720_v35 }
 0x790   :  { %v725_v2 = vpop.xlane.xlu0 %724 }
 0x791   :  { %v727_v3 = vmul.f32 0.03125, %v725_v2  ;;  %v722_v4 = vpop.xlane.xlu1 %721 }
 0x792   :  { %v726_v5 = vmul.f32 0.03125, %v722_v4 }
 0x793   :  { %v729_v6 = vadd.f32 1e-05, %v727_v3 }
 0x794   :  { %v728_v7 = vadd.f32 1e-05, %v726_v5 }
 0x795   :  { %2191 = vrsqrt.f32 %v729_v6 }
 0x796   :  { %2193 = vrsqrt.f32 %v728_v7 }
 0x79f   :  { %v2192_v11 = vpop.eup %2191 }
 0x7a0   :  { %v2194_v12 = vpop.eup %2193  ;;  %v733_v13 = vmul.f32 %v2192_v11, %v717_v56 }
 0x7a1   :  { %v732_v14 = vmul.f32 %v2194_v12, %v716_v57 }
 0x7a2   :  { %v739_v16 = vmul.f32 %v737_v10, %v733_v13 }
 0x7a3   :  { %v738_v17 = vmul.f32 %v737_v10, %v732_v14 }
 0x7a4   :  { %v745_v19 = vadd.f32 %v743_v15, %v739_v16 }
 0x7a5   :  { %v744_v18 = vadd.f32 %v743_v15, %v738_v17 }
 0x7a7   :  { %1961 = vmatprep.mubr.msk.f32.mxu0 %vm159_vm4, %v744_v18 }
 0x7a8   :  { %1962 = vmatmul.mubr.msk.f32.vlgmr.msra.gmra.mrb[2].mxu0 %vm159_vm4, %v745_v19 }
 0x7a9   :  { %2126 = vmatpush3.bf16.msra.mxu0 %v2123_v23 }
 0x7aa   :  { %2128 = vmatprep.subr.bf16.mxu0 %v2127_v25 }
 0x7ad   :  { %2130 = vmatpush3.bf16.msra.mxu0 %v2127_v25  ;;  %v1646_v25 = vrot.slane %v35_v24, 2 }
 0x87b   :  { %v1963_v41 = vpop.f32.mrb[2].mxu0 }
 0x87c   :  { %v832_v43 = vadd.f32 %v1963_v41, %v753_v40  ;;  %v826_v44 = vpop.f32.mrb[3].mxu0  ;;  %v978_v41 = vrot.slane %v2346_v39, %v977_v34 }
 0x87d   :  { %v827_v45 = vadd.f32 %v826_v44, %v753_v40  ;;  %v983_v40 = vsub.s32 7, %v2336_v37  ;;  %v993_v44 = vadd.s32 8, %v2336_v37 }
 0x87e   :  { %v838_v46 = vmul.f32 0.044715, %v832_v43  ;;  %v836_v35 = vmul.f32 0.5, %v832_v43 }
 0x87f   :  { %v837_v47 = vmul.f32 0.044715, %v827_v45  ;;  %v835_v59 = vmul.f32 0.5, %v827_v45 }
 0x880   :  { %v840_v48 = vmul.f32 %v838_v46, %v832_v43  ;;  %v984_v46 = vrot.slane %v2346_v39, %v983_v40 }
 0x881   :  { %v839_v49 = vmul.f32 %v837_v47, %v827_v45 }
 0x882   :  { %v842_v50 = vmul.f32 %v840_v48, %v832_v43 }
 0x883   :  { %v841_v51 = vmul.f32 %v839_v49, %v827_v45 }
 0x884   :  { %v844_v52 = vadd.f32 %v842_v50, %v832_v43 }
 0x885   :  { %v843_v53 = vadd.f32 %v841_v51, %v827_v45  ;;  %v995_v51 = vadd.s32 1, %v993_v44 }
 0x886   :  { %v846_v54 = vmul.f32 0.7978846, %v844_v52 }
 0x887   :  { %v845_v55 = vmul.f32 0.7978846, %v843_v53  ;;  %v1251_v53 = vadd.s32 2, %v2336_v37  ;;  %vm997_vm10 = vcmp.eq.s32.totalorder %v2322_v30, %v995_v51 }
 0x888   :  { %2195 = vtanh.f32 %v846_v54  ;;  %v1759_v39 = vsel %vm997_vm10, 1.0, %v2204_v26 }
 0x889   :  { %2197 = vtanh.f32 %v845_v55  ;;  %vm1253_vm11 = vcmp.eq.s32.totalorder %v2322_v30, %v1251_v53 }
 0x892   :  { %v2196_v56 = vpop.eup %2195 }
 0x893   :  { %v2198_v57 = vpop.eup %2197  ;;  %v850_v58 = vadd.f32 1.0, %v2196_v56  ;;  %v1252_v56 = vadd.s32 2, %v993_v44 }
 0x894   :  { %v849_v60 = vadd.f32 1.0, %v2198_v57  ;;  %v1428_v57 = vadd.s32 3, %v2336_v37 }
 0x895   :  { %v852_v61 = vmul.f32 %v850_v58, %v836_v35  ;;  %v1770_v58 = vsel %vm1253_vm11, 1.0, %v2204_v26  ;;  %vm1254_vm12 = vcmp.eq.s32.totalorder %v2322_v30, %v1252_v56 }
 0x896   :  { %v851_v36 = vmul.f32 %v849_v60, %v835_v59  ;;  %v1429_v59 = vadd.s32 3, %v993_v44  ;;  %vm1430_vm13 = vcmp.eq.s32.totalorder %v2322_v30, %v1428_v57  ;;  %v1771_v60 = vsel %vm1254_vm12, 1.0, %v2204_v26 }
 0x897   :  { %v1780_v35 = vsel %vm1430_vm13, 1.0, %v2204_v26 }
 0x898   :  { %1980 = vmatprep.mubr.msk.f32.mxu1 %vm865_vm7, %v851_v36  ;;  %vm1431_vm14 = vcmp.eq.s32.totalorder %v2322_v30, %v1429_v59  ;;  %v1640_v59 = vrot.slane %v33_v20, %v622_v42 }
 0x899   :  { %1981 = vmatmul.mubr.msk.f32.vlgmr.msra.gmra.mrb[12].mxu1 %vm865_vm7, %v852_v61  ;;  %v1781_v36 = vsel %vm1431_vm14, 1.0, %v2204_v26  ;;  %v987_v61 = vld [vmem:[%s2561_s7] sm:$0xff] }
 0x96c   :  { %v1982_v0 = vpop.f32.mrb[12].mxu1 }
 0x96d   :  { %v944_v1 = vadd.f32 %v1982_v0, %v864_v63  ;;  %v938_v2 = vpop.f32.mrb[13].mxu1  ;;  %v990_v0 = vld [vmem:[%s2561_s7 + $0x18] sm:$0xff] }
 0x96e   :  { %v939_v3 = vadd.f32 %v938_v2, %v864_v63  ;;  %v989_v63 = vld [vmem:[%s2561_s7 + $0x10] sm:$0xff] }
 0x96f   :  { %v948_v4 = vadd.f32 %v944_v1, %v745_v19  ;;  %v2135_v2 = vpack.c.bf16 %v990_v0, %v989_v63 }
 0x970   :  { %v947_v5 = vadd.f32 %v939_v3, %v744_v18  ;;  %v994_v18 = vadd.s32 1, %v2336_v37  ;;  %v1774_v3 = vld [vmem:[%s2561_s7 + $0x40] sm:$0xff] }
 0x971   :  { %v952_v6 = vsel %vm159_vm4, %v948_v4, 0.0 }
 0x972   :  { %953 = vadd.xlane.f32.xlu0 %v952_v6  ;;  %v949_v7 = vsel %vm159_vm4, %v947_v5, 0.0  ;;  %vm996_vm8 = vcmp.eq.s32.totalorder %v2322_v30, %v994_v18  ;;  %v988_v30 = vld [vmem:[%s2561_s7 + $0x8] sm:$0xff] }
 0x973   :  { %950 = vadd.xlane.f32.xlu1 %v949_v7  ;;  %v1758_v19 = vsel %vm996_vm8, 1.0, %v2204_v26  ;;  %v2131_v62 = vpack.c.bf16 %v988_v30, %v987_v61 }
 0x974   :  { %1987 = vmatprep.mubr.msk.f32.mxu1 %vm1002_vm9, %v1758_v19  ;;  %v34_v19 = vld [vmem:[%s2556_s8 + $0x10] sm:$0xff]  ;;  %s2211_s8 = smov 12  }
 0x975   :  { %2132 = vmatprep.subr.bf16.mxu0 %v2131_v62  ;;  %v1617_v22 = vrot.slane %v34_v19, 2 }
 0x977   :  { %v1618_v23 = vsel %vm1615_vm15, %v1616_v21, %v1617_v22 }
 0x9ff   :  { %v954_v8 = vpop.xlane.xlu0 %953 }
 0xa00   :  { %v956_v9 = vmul.f32 0.03125, %v954_v8  ;;  %v951_v10 = vpop.xlane.xlu1 %950  ;;  %v1776_v8 = vld [vmem:[%s2561_s7 + $0x50] sm:$0xff] }
 0xa01   :  { %v955_v11 = vmul.f32 0.03125, %v951_v10 }
 0xa02   :  { %v958_v12 = vsub.f32 %v948_v4, %v956_v9  ;;  %v1775_v4 = vld [vmem:[%s2561_s7 + $0x48] sm:$0xff]  ;;  %v1777_v9 = vld [vmem:[%s2561_s7 + $0x58] sm:$0xff] }
 0xa03   :  { %v957_v13 = vsub.f32 %v947_v5, %v955_v11  ;;  %v2143_v6 = vpack.c.bf16 %v1775_v4, %v1774_v3  ;;  %v2147_v11 = vpack.c.bf16 %v1777_v9, %v1776_v8 }
 0xa04   :  { %v960_v14 = vmul.f32 %v958_v12, %v958_v12 }
 0xa05   :  { %v959_v15 = vmul.f32 %v957_v13, %v957_v13 }
 0xa06   :  { %v964_v16 = vsel %vm159_vm4, %v960_v14, 0.0  ;;  %v1785_v14 = vld [vmem:[%s2561_s7 + $0x68] sm:$0xff] }
 0xa07   :  { %965 = vadd.xlane.f32.xlu0 %v964_v16  ;;  %v961_v17 = vsel %vm159_vm4, %v959_v15, 0.0  ;;  %v1786_v16 = vld [vmem:[%s2561_s7 + $0x70] sm:$0xff] }
 0xa08   :  { %962 = vadd.xlane.f32.xlu1 %v961_v17  ;;  %v1787_v17 = vld [vmem:[%s2561_s7 + $0x78] sm:$0xff] }
 0xa09   :  { %v2159_v18 = vpack.c.bf16 %v1787_v17, %v1786_v16 }
 0xa94   :  { %v966_v27 = vpop.xlane.xlu0 %965 }
 0xa95   :  { %v968_v28 = vmul.f32 0.03125, %v966_v27  ;;  %v963_v29 = vpop.xlane.xlu1 %962  ;;  %v1647_v27 = vsel %vm1615_vm15, %v1617_v22, %v1646_v25 }
 0xa96   :  { %v967_v31 = vmul.f32 0.03125, %v963_v29  ;;  %v2209_v29 = vmov 0.0|0.0  }
 0xa97   :  { %v970_v32 = vadd.f32 1e-05, %v968_v28  ;;  %v2164_v28 = vpack.c.bf16 %v1646_v25, %v1647_v27 }
 0xa98   :  { %v969_v33 = vadd.f32 1e-05, %v967_v31  ;;  %v1608_v31 = vrot.slane %v33_v20, %v2341_v38 }
 0xa99   :  { %2199 = vrsqrt.f32 %v970_v32 }
 0xa9a   :  { %2201 = vrsqrt.f32 %v969_v33 }
 0xaa3   :  { %v2200_v43 = vpop.eup %2199 }
 0xaa4   :  { %v2202_v45 = vpop.eup %2201  ;;  %v974_v47 = vmul.f32 %v2200_v43, %v958_v12 }
 0xaa5   :  { %v973_v48 = vmul.f32 %v2202_v45, %v957_v13  ;;  %v1784_v13 = vld [vmem:[%s2561_s7 + $0x60] sm:$0xff] }
 0xaa6   :  { %v980_v49 = vmul.f32 %v978_v41, %v974_v47  ;;  %v2155_v15 = vpack.c.bf16 %v1785_v14, %v1784_v13 }
 0xaa7   :  { %v979_v50 = vmul.f32 %v978_v41, %v973_v48 }
 0xaa8   :  { %v986_v52 = vadd.f32 %v984_v46, %v980_v49 }
 0xaa9   :  { %v985_v54 = vadd.f32 %v984_v46, %v979_v50 }
 0xaab   :  { %v2119_v55 = vpack.c.bf16 %v986_v52, %v985_v54 }
 0xaad   :  { %2120 = vmatprep.subr.bf16.mxu1 %v2119_v55 }
 0xaae   :  { %2122 = vmatpush3.bf16.msra.mxu1 %v2119_v55 }
 0xaaf   :  { %2140 = vmatprep.subr.bf16.mxu1 %v2119_v55 }
 0xab1   :  { %1988 = vmatmul.mubr.msk.f32.vlgmr.msra.gmra.mrb[14].mxu1 %vm1002_vm9, %v1759_v39 }
 0xab2   :  { %2142 = vmatpush3.bf16.msra.mxu1 %v2119_v55  ;;  %2016 = vmatprep.mubr.msk.f32.mxu1 %vm1002_vm9, %v1770_v58 }
 0xab3   :  { %2152 = vmatprep.subr.bf16.mxu1 %v2119_v55 }
 0xab5   :  { %2017 = vmatmul.mubr.msk.f32.vlgmr.msra.gmra.mrb[16].mxu1 %vm1002_vm9, %v1771_v60 }
 0xab6   :  { %2154 = vmatpush3.bf16.msra.mxu1 %v2119_v55  ;;  %2034 = vmatprep.mubr.msk.f32.mxu1 %vm1002_vm9, %v1780_v35 }
 0xab7   :  { %2163 = vmatprep.subr.bf16.mxu1 %v2209_v29 }
 0xab9   :  { %2035 = vmatmul.mubr.msk.f32.vlgmr.msra.gmra.mrb[18].mxu1 %vm1002_vm9, %v1781_v36 }
 0xaba   :  { %2052 = vmatprep.mubr.msk.f32.mxu1 %vm2205_vm5, %v2204_v26  ;;  %2166 = vmatpush3.bf16.msk.msra.mxu1 %vm2165_vm2, %v2164_v28 }
 0xb84   :  { %v1989_v1 = vpop.f32.mrb[14].mxu1 }
 0xb85   :  { %v1075_v26 = vpop.f32.mrb[15].mxu1 }
 0xb86   :  { %1998 = vmatprep.mubr.msk.f32.mxu0 %vm159_vm4, %v1075_v26 }
 0xb87   :  { %1999 = vmatmul.mubr.msk.f32.vlgmr.msra.gmra.mrb[4].mxu0 %vm159_vm4, %v1989_v1 }
 0xb88   :  { %2134 = vmatpush3.bf16.msra.mxu0 %v2131_v62  ;;  %2009 = vmatprep.mubr.msk.f32.mxu0 %vm159_vm4, %v985_v54  ;;  %v2018_v5 = vpop.f32.mrb[16].mxu1 }
 0xb89   :  { %2136 = vmatprep.subr.bf16.mxu0 %v2135_v2  ;;  %v1331_v7 = vpop.f32.mrb[17].mxu1 }
 0xb8c   :  { %2138 = vmatpush3.bf16.msra.mxu0 %v2135_v2  ;;  %v2036_v10 = vpop.f32.mrb[18].mxu1 }
 0xb8d   :  { %2144 = vmatprep.subr.bf16.mxu0 %v2143_v6  ;;  %v1508_v12 = vpop.f32.mrb[19].mxu1 }
 0xb8f   :  { %2010 = vmatmul.mubr.msk.f32.vlgmr.msra.gmra.mrb[4].mxu0 %vm159_vm4, %v986_v52 }
 0xb90   :  { %2146 = vmatpush3.bf16.msra.mxu0 %v2143_v6  ;;  %2027 = vmatprep.mubr.msk.f32.mxu0 %vm159_vm4, %v1331_v7 }
 0xb91   :  { %2148 = vmatprep.subr.bf16.mxu0 %v2147_v11 }
 0xb94   :  { %2150 = vmatpush3.bf16.msra.mxu0 %v2147_v11 }
 0xb95   :  { %2156 = vmatprep.subr.bf16.mxu0 %v2155_v15 }
 0xb97   :  { %2028 = vmatmul.mubr.msk.f32.vlgmr.msra.gmra.mrb[4].mxu0 %vm159_vm4, %v2018_v5 }
 0xb98   :  { %2158 = vmatpush3.bf16.msra.mxu0 %v2155_v15  ;;  %2045 = vmatprep.mubr.msk.f32.mxu0 %vm159_vm4, %v1508_v12 }
 0xb99   :  { %2160 = vmatprep.subr.bf16.mxu0 %v2159_v18 }
 0xb9c   :  { %2162 = vmatpush3.bf16.msra.mxu0 %v2159_v18 }
 0xb9f   :  { %2046 = vmatmul.mubr.msk.f32.vlgmr.msra.gmra.mrb[4].mxu0 %vm159_vm4, %v2036_v10  ;;  %vm1729_vm4 = vcmask 138240  }
 0xc72   :  { %v2047_v32 = vpop.f32.mrb[4].mxu0 }
 0xc73   :  { %v1610_v33 = vadd.f32 %v2047_v32, %v1608_v31  ;;  %v1594_v34 = vpop.f32.mrb[5].mxu0 }
 0xc74   :  { %v1609_v40 = vadd.f32 %v1608_v31, %v1594_v34 }
 0xc75   :  { %v1612_v41 = vmax.f32 %v1610_v33, 0.0 }
 0xc76   :  { %v1611_v43 = vmax.f32 %v1609_v40, 0.0 }
 0xc77   :  { %v1621_v44 = vadd.f32 %v1618_v23, %v1612_v41 }
 0xc78   :  { %v1620_v45 = vadd.f32 %v1618_v23, %v1611_v43 }
 0xc79   :  { %v1630_v46 = vsel %vm1622_vm3, %v1621_v44, -inf }
 0xc7a   :  { %v1631_v47 = vrot.slane %v1630_v46, 4  ;;  %v1623_v48 = vsel %vm1622_vm3, %v1620_v45, -inf }
 0xc7b   :  { %v1624_v49 = vrot.slane %v1623_v48, 4 }
 0xc7c   :  { %v1632_v50 = vmax.f32 %v1630_v46, %v1631_v47 }
 0xc7d   :  { %v1625_v51 = vmax.f32 %v1623_v48, %v1624_v49 }
 0xc7e   :  { %v1633_v52 = vrot.slane %v1632_v50, 2 }
 0xc7f   :  { %v1626_v53 = vrot.slane %v1625_v51, 2 }
 0xc80   :  { %v1634_v38 = vmax.f32 %v1632_v50, %v1633_v52 }
 0xc81   :  { %v1627_v54 = vmax.f32 %v1625_v51, %v1626_v53 }
 0xc82   :  { %v1635_v55 = vrot.slane %v1634_v38, 1 }
 0xc83   :  { %v1628_v56 = vrot.slane %v1627_v54, 1 }
 0xc84   :  { %v1636_v57 = vmax.f32 %v1634_v38, %v1635_v55 }
 0xc85   :  { %v1629_v39 = vmax.f32 %v1627_v54, %v1628_v56 }
 0xc87   :  { %v1644_v58 = vsel %vm1643_vm0, %v1636_v57, %v1629_v39 }
 0xc88   :  { %2053 = vmatmul.mubr.msk.f32.vlgmr.msra.gmra.mrb[20].mxu1 %vm1622_vm3, %v1644_v58 }
 0xd5b   :  { %v1719_v60 = vpop.f32.mrb[20].mxu1 }
 0xd5c   :  { %v1720_v35 = vadd.f32 %v1719_v60, %v1640_v59  ;;  %v2054_v36 = vpop.f32.mrb[21].mxu1 }
 0xd5e   :  { %1725 = vrot.lane.b32.xlu1 %v1720_v35, %s2211_s8 }
 0xdd0   :  { %v1726_v61 = vpop.permute.xlu1 %1725 }
 0xdd1   :  { %v1728_v30 = vsel %vm1622_vm3, %v1644_v58, %v1726_v61 }
 0xdd2   :  { %v1730_v62 = vsel %vm1729_vm4, %v1728_v30, 0.0 }
 0xdd3   :  { %1731 = vst [vmem:[%s2562_s9] sm:$0x3] %v1730_v62 }

</bundles_post_ra>
